<compile_context>
chip_gen: v5e
topology: v5e:2x2
jax: 0.10.0
libtpu: 0.0.40
codegen_flags: <defaults>
</compile_context>

<pallas_src>
import math

import jax
import jax.numpy as jnp
from jax.experimental import pallas as pl
from jax.experimental.pallas import tpu as pltpu


def _round_up(x, m):
    return (x + m - 1) // m * m


def _cdiv(a, b):
    return -(-a // b)


# --------------------------- Pallas kernel ---------------------------

def _conv_gemm_kernel(a_ref, w_ref, b_ref, o_ref):
    """One (Cout-tile x M-tile) block of the im2col GEMM.

    a_ref: (tm, K)  bf16 patches  (M on sublanes, K on lanes, K = full dim)
    w_ref: (tc, K)  bf16 weights  (Cout on sublanes)
    b_ref: (tc, 1)  f32  bias
    o_ref: (tc, tm) bf16 output   (M on lanes -> lane-dense unmasked stores)

    K fits a single full-length block, so there is no K grid axis, no accumulator
    scratch and no pl.when phases: dot (f32 MXU accumulate) -> bias -> ReLU -> store.
    """
    acc = jax.lax.dot_general(
        w_ref[...], a_ref[...],
        dimension_numbers=(((1,), (1,)), ((), ())),   # contract K (last dim of both)
        preferred_element_type=jnp.float32)           # (tc, tm) f32
    o_ref[...] = jnp.maximum(acc + b_ref[...], 0.0).astype(o_ref.dtype)


def _conv_gemm(patches_bf16, w_packed, b_packed, *, tm_max=1024):
    """patches: (M, K) bf16; w_packed: (Cp, K) bf16; b_packed: (Cp, 1) f32.
    Returns (Cp, Mp) bf16 — caller slices [:cout, :M]."""
    M, K = patches_bf16.shape
    Cp, Kw = w_packed.shape
    assert K == Kw

    # Cap the A tile so tm*K bf16 (double-buffered) stays well inside VMEM on v7x.
    tm_cap = max(128, min(tm_max, ((8 << 20) // max(1, 2 * K)) // 128 * 128))

    # M on lanes: 128-multiple tiles; ensure >=2 M-tiles when possible so v7x's
    # second TensorCore gets work (no effect on single-TC v5e/v6e).
    mp128 = _round_up(M, 128)
    ntiles = max(1, _cdiv(mp128, tm_cap))
    if ntiles == 1 and mp128 >= 256:
        ntiles = 2
    tm = _round_up(_cdiv(mp128, ntiles), 128)
    mp = tm * ntiles

    if mp != M:
        patches_bf16 = jnp.pad(patches_bf16, ((0, mp - M), (0, 0)))

    # Cout tile: full when small (8/16 here); 256-wide for the v6e/v7x MXU otherwise.
    if Cp <= 256:
        tc = Cp
    elif Cp % 256 == 0:
        tc = 256
    elif Cp % 128 == 0:
        tc = 128
    else:
        tc = 8

    grid = (mp // tm, Cp // tc)
    return pl.pallas_call(
        _conv_gemm_kernel,
        out_shape=jax.ShapeDtypeStruct((Cp, mp), jnp.bfloat16),
        grid_spec=pltpu.PrefetchScalarGridSpec(
            num_scalar_prefetch=0,
            grid=grid,
            in_specs=[
                pl.BlockSpec((tm, K), lambda i, j: (i, 0)),
                pl.BlockSpec((tc, K), lambda i, j: (j, 0)),
                pl.BlockSpec((tc, 1), lambda i, j: (j, 0)),
            ],
            out_specs=pl.BlockSpec((tc, tm), lambda i, j: (j, i)),
        ),
        compiler_params=pltpu.CompilerParams(
            dimension_semantics=("parallel", "parallel"),
            vmem_limit_bytes=48 * 1024 * 1024,   # headroom, still safe on v7x (64 MiB)
        ),
    )(patches_bf16, w_packed, b_packed)


# --------------------------- wrappers (glue) ---------------------------

def conv3x3_s2_relu(x_nhwc, w_packed, b_packed, cout):
    """3x3 conv, stride 2, pad 1, + ReLU via im2col GEMM (bf16 activations end-to-end).
    x: (N,H,W,Cin) bf16; w_packed: (Cp, K) bf16; b_packed: (Cp, 1) f32 -> (N,Ho,Wo,cout) bf16."""
    N, H, W, Cin = x_nhwc.shape
    k, s, p = 3, 2, 1
    Ho = (H + 2 * p - k) // s + 1
    Wo = (W + 2 * p - k) // s + 1
    # TODO(synk): replace this explicit im2col with implicit im2col inside the kernel
    # (grid over output spatial tiles, 1-pixel halo via memory_space=pl.ANY +
    # pltpu.make_async_copy, 9 in-kernel tap accumulations) so the activation volume
    # is not inflated k*k/s^2 = 2.25x through HBM.
    xp = jnp.pad(x_nhwc, ((0, 0), (p, p), (p, p), (0, 0)))     # bf16, 1-pixel halo
    cols = [
        xp[:, i:i + (Ho - 1) * s + 1:s, j:j + (Wo - 1) * s + 1:s, :]
        for i in range(k) for j in range(k)
    ]
    patches = jnp.concatenate(cols, axis=-1).reshape(N * Ho * Wo, k * k * Cin)  # (M, K) bf16
    out_cm = _conv_gemm(patches, w_packed, b_packed)            # (Cp, Mp) bf16
    out = out_cm[:cout, :N * Ho * Wo]                           # (cout, M)
    return jnp.transpose(out, (1, 0)).reshape(N, Ho, Wo, cout)  # bf16 NHWC


def interpolate_mask_nearest(mask_bool, Hf, Wf):
    """Matches F.interpolate(m[None].float(), size=(Hf, Wf)).to(torch.bool)[0]
    (default mode='nearest': src = floor(dst * in/out)).  Pure index gather,
    emits bool directly (no f32 intermediate, no kernel)."""
    _, H, W = mask_bool.shape
    ridx = (jnp.arange(Hf) * H) // Hf
    cidx = (jnp.arange(Wf) * W) // Wf
    return mask_bool[:, ridx][:, :, cidx]


class MaskedBackbonePallas:
    """JAX/Pallas port of MaskedBackbone with a synthetic 2-level conv backbone.
    forward(tensors_NCHW, mask) -> {name: (features_NCHW bf16, mask_bool_at_feature_res)}"""

    SUBLANE = 8  # Cout padded only to the sublane granularity (no 128-lane padding)

    def __init__(self, key, in_channels=4, channels=(8, 16)):
        # mirrors: feature_strides / num_channels pulled from backbone.output_shape()
        self.feature_strides = [2 ** (i + 1) for i in range(len(channels))]
        self.num_channels = list(channels)
        self.ref_params = []      # original f32 (w_hwio, b) for reference checks
        self.packed_params = []   # (w_packed bf16 (Cp, K), b_packed f32 (Cp, 1), cout)
        cin = in_channels
        for cout in channels:
            key, kw, kb = jax.random.split(key, 3)
            w = jax.random.normal(kw, (3, 3, cin, cout), jnp.float32) * (
                1.0 / (3 * 3 * cin) ** 0.5)
            b = jax.random.normal(kb, (cout,), jnp.float32) * 0.01
            self.ref_params.append((w, b))
            # pack once at init, tile-aligned: (Cout_pad8, K) bf16 weights, (Cp,1) f32 bias.
            K = 3 * 3 * cin
            Cp = _round_up(cout, self.SUBLANE)
            w_km = w.reshape(K, cout)                   # (kh, kw, cin) flattening
            w_packed = jnp.zeros((Cp, K), jnp.bfloat16)
            w_packed = w_packed.at[:cout, :].set(w_km.T.astype(jnp.bfloat16))
            b_packed = jnp.zeros((Cp, 1), jnp.float32).at[:cout, 0].set(b)
            self.packed_params.append((w_packed, b_packed, cout))
            cin = cout

    def __call__(self, tensors_nchw, mask):
        # NCHW -> NHWC, cast to bf16 once; the whole backbone runs in bf16.
        x = jnp.transpose(tensors_nchw, (0, 2, 3, 1)).astype(jnp.bfloat16)
        feats = {}
        h = x
        for li, (w_packed, b_packed, cout) in enumerate(self.packed_params):
            h = conv3x3_s2_relu(h, w_packed, b_packed, cout)
            feats[f"p{li + 2}"] = h
        out = {}
        for name, f in feats.items():
            Hf, Wf = f.shape[1], f.shape[2]
            m = interpolate_mask_nearest(mask, Hf, Wf)
            # consumer expects NCHW (PyTorch convention); one small transpose/level.
            out[name] = (jnp.transpose(f, (0, 3, 1, 2)), m)
        return out

    def mask_out_padding(self, feature_shapes, image_sizes):
        """Mirrors MaskedBackbone.mask_out_padding (True == padded)."""
        masks = []
        assert len(feature_shapes) == len(self.feature_strides)
        for idx, shape in enumerate(feature_shapes):
            _, _, H, W = shape
            stride = self.feature_strides[idx]
            rows = jnp.arange(H)[None, :, None]
            cols = jnp.arange(W)[None, None, :]
            hs = jnp.array([int(math.ceil(float(h) / stride)) for h, _ in image_sizes])[:, None, None]
            ws = jnp.array([int(math.ceil(float(w) / stride)) for _, w in image_sizes])[:, None, None]
            masks.append((rows >= hs) | (cols >= ws))
        return masks


# --------------------------- main ---------------------------

if __name__ == "__main__":
    key = jax.random.PRNGKey(0)
    kx, kparams = jax.random.split(key)
    N, C, H, W = 2, 4, 16, 16
    tensors = jax.random.normal(kx, (N, C, H, W), jnp.float32)

    # padding mask: True == padded pixel (NestedTensor convention)
    image_sizes = [(13, 15), (16, 12)]
    rows = jnp.arange(H)[None, :, None]
    cols = jnp.arange(W)[None, None, :]
    hs = jnp.array([s[0] for s in image_sizes])[:, None, None]
    ws = jnp.array([s[1] for s in image_sizes])[:, None, None]
    mask = (rows >= hs) | (cols >= ws)

    model = MaskedBackbonePallas(kparams, in_channels=C, channels=(8, 16))
    fwd = jax.jit(model.__call__)
    out = fwd(tensors, mask)
    jax.block_until_ready(out)

    # correctness checks vs pure-JAX references (same bf16 pipeline as the kernel)
    h_ref = jnp.transpose(tensors, (0, 2, 3, 1)).astype(jnp.bfloat16)
    for li, (w, b) in enumerate(model.ref_params):
        conv = jax.lax.conv_general_dilated(
            h_ref, w.astype(jnp.bfloat16),
            window_strides=(2, 2), padding=((1, 1), (1, 1)),
            dimension_numbers=("NHWC", "HWIO", "NHWC"),
            preferred_element_type=jnp.float32)
        h_ref = jnp.maximum(conv + b, 0.0).astype(jnp.bfloat16)
        name = f"p{li + 2}"
        feat, m_out = out[name]
        ref_nchw = jnp.transpose(h_ref, (0, 3, 1, 2)).astype(jnp.float32)
        assert jnp.allclose(feat.astype(jnp.float32), ref_nchw,
                            rtol=2e-2, atol=2e-2), f"conv mismatch at {name}"
        Hf, Wf = h_ref.shape[1], h_ref.shape[2]
        ridx = (jnp.arange(Hf) * H) // Hf
        cidx = (jnp.arange(Wf) * W) // Wf
        m_ref = mask[:, ridx][:, :, cidx]
        assert bool(jnp.all(m_out == m_ref)), f"mask mismatch at {name}"

    print("KERNEL_OK")
</pallas_src>

<mosaic_0001>
module attributes {stable_mosaic.version = 11 : i64} {
  func.func @_conv_gemm_kernel(%arg0: i32, %arg1: i32, %arg2: memref<128x36xbf16, #tpu.memory_space<vmem>>, %arg3: memref<8x36xbf16, #tpu.memory_space<vmem>>, %arg4: memref<8x1xf32, #tpu.memory_space<vmem>>, %arg5: memref<8x128xbf16, #tpu.memory_space<vmem>>) attributes {dimension_semantics = [#tpu.dimension_semantics<parallel>, #tpu.dimension_semantics<parallel>], iteration_bounds = array<i64: 1, 1>, scalar_prefetch = 0 : i64, scratch_operands = 0 : i64, tpu.core_type = #tpu.core_type<tc>, window_params = [{transform_indices = @transform_0, window_bounds = array<i64: 128, 36>}, {transform_indices = @transform_1, window_bounds = array<i64: 8, 36>}, {transform_indices = @transform_2, window_bounds = array<i64: 8, 1>}, {transform_indices = @transform_3, window_bounds = array<i64: 8, 128>}]} {
    %c0 = arith.constant 0 : index
    %c0_0 = arith.constant 0 : index
    %0 = vector.load %arg3[%c0, %c0_0] : memref<8x36xbf16, #tpu.memory_space<vmem>>, vector<8x36xbf16>
    %c0_1 = arith.constant 0 : index
    %c0_2 = arith.constant 0 : index
    %1 = vector.load %arg2[%c0_1, %c0_2] : memref<128x36xbf16, #tpu.memory_space<vmem>>, vector<128x36xbf16>
    %cst = arith.constant dense<0.000000e+00> : vector<8x128xf32>
    %2 = tpu.matmul %0, %1, %cst {dimension_numbers = #tpu.dot_dimension_numbers<[1], [1], [0], [0], [0, 0, 1, 0], [], []>} : vector<8x36xbf16>, vector<128x36xbf16>, vector<8x128xf32> -> vector<8x128xf32>
    %c0_3 = arith.constant 0 : index
    %c0_4 = arith.constant 0 : index
    %3 = vector.load %arg4[%c0_3, %c0_4] : memref<8x1xf32, #tpu.memory_space<vmem>>, vector<8x1xf32>
    %4 = vector.broadcast %3 : vector<8x1xf32> to vector<8x128xf32>
    %5 = arith.addf %2, %4 : vector<8x128xf32>
    %cst_5 = arith.constant 0.000000e+00 : f32
    %6 = vector.broadcast %cst_5 : f32 to vector<8x128xf32>
    %7 = arith.maximumf %5, %6 : vector<8x128xf32>
    %8 = arith.truncf %7 : vector<8x128xf32> to vector<8x128xbf16>
    %c0_6 = arith.constant 0 : index
    %c0_7 = arith.constant 0 : index
    %9 = vector.load %arg5[%c0_6, %c0_7] : memref<8x128xbf16, #tpu.memory_space<vmem>>, vector<8x128xbf16>
    tpu.vector_store %arg5[%c0_6, %c0_7], %8 {strides = array<i32>} : memref<8x128xbf16, #tpu.memory_space<vmem>>, vector<8x128xbf16>,
    return
  }
  func.func @transform_0(%arg0: i32, %arg1: i32) -> (i32, i32) {
    %c0_i32 = arith.constant 0 : i32
    %c0_i32_0 = arith.constant 0 : i32
    return %arg0, %c0_i32 : i32, i32
  }
  func.func @transform_1(%arg0: i32, %arg1: i32) -> (i32, i32) {
    %c0_i32 = arith.constant 0 : i32
    %c0_i32_0 = arith.constant 0 : i32
    return %arg1, %c0_i32 : i32, i32
  }
  func.func @transform_2(%arg0: i32, %arg1: i32) -> (i32, i32) {
    %c0_i32 = arith.constant 0 : i32
    %c0_i32_0 = arith.constant 0 : i32
    return %arg1, %c0_i32 : i32, i32
  }
  func.func @transform_3(%arg0: i32, %arg1: i32) -> (i32, i32) {
    %c0_i32 = arith.constant 0 : i32
    return %arg1, %arg0 : i32, i32
  }
}

module attributes {stable_mosaic.version = 11 : i64} {
  func.func @_conv_gemm_kernel(%arg0: i32, %arg1: i32, %arg2: memref<128x72xbf16, #tpu.memory_space<vmem>>, %arg3: memref<16x72xbf16, #tpu.memory_space<vmem>>, %arg4: memref<16x1xf32, #tpu.memory_space<vmem>>, %arg5: memref<16x128xbf16, #tpu.memory_space<vmem>>) attributes {dimension_semantics = [#tpu.dimension_semantics<parallel>, #tpu.dimension_semantics<parallel>], iteration_bounds = array<i64: 1, 1>, scalar_prefetch = 0 : i64, scratch_operands = 0 : i64, tpu.core_type = #tpu.core_type<tc>, window_params = [{transform_indices = @transform_0, window_bounds = array<i64: 128, 72>}, {transform_indices = @transform_1, window_bounds = array<i64: 16, 72>}, {transform_indices = @transform_2, window_bounds = array<i64: 16, 1>}, {transform_indices = @transform_3, window_bounds = array<i64: 16, 128>}]} {
    %c0 = arith.constant 0 : index
    %c0_0 = arith.constant 0 : index
    %0 = vector.load %arg3[%c0, %c0_0] : memref<16x72xbf16, #tpu.memory_space<vmem>>, vector<16x72xbf16>
    %c0_1 = arith.constant 0 : index
    %c0_2 = arith.constant 0 : index
    %1 = vector.load %arg2[%c0_1, %c0_2] : memref<128x72xbf16, #tpu.memory_space<vmem>>, vector<128x72xbf16>
    %cst = arith.constant dense<0.000000e+00> : vector<16x128xf32>
    %2 = tpu.matmul %0, %1, %cst {dimension_numbers = #tpu.dot_dimension_numbers<[1], [1], [0], [0], [0, 0, 1, 0], [], []>} : vector<16x72xbf16>, vector<128x72xbf16>, vector<16x128xf32> -> vector<16x128xf32>
    %c0_3 = arith.constant 0 : index
    %c0_4 = arith.constant 0 : index
    %3 = vector.load %arg4[%c0_3, %c0_4] : memref<16x1xf32, #tpu.memory_space<vmem>>, vector<16x1xf32>
    %4 = vector.broadcast %3 : vector<16x1xf32> to vector<16x128xf32>
    %5 = arith.addf %2, %4 : vector<16x128xf32>
    %cst_5 = arith.constant 0.000000e+00 : f32
    %6 = vector.broadcast %cst_5 : f32 to vector<16x128xf32>
    %7 = arith.maximumf %5, %6 : vector<16x128xf32>
    %8 = arith.truncf %7 : vector<16x128xf32> to vector<16x128xbf16>
    %c0_6 = arith.constant 0 : index
    %c0_7 = arith.constant 0 : index
    %9 = vector.load %arg5[%c0_6, %c0_7] : memref<16x128xbf16, #tpu.memory_space<vmem>>, vector<16x128xbf16>
    tpu.vector_store %arg5[%c0_6, %c0_7], %8 {strides = array<i32>} : memref<16x128xbf16, #tpu.memory_space<vmem>>, vector<16x128xbf16>,
    return
  }
  func.func @transform_0(%arg0: i32, %arg1: i32) -> (i32, i32) {
    %c0_i32 = arith.constant 0 : i32
    %c0_i32_0 = arith.constant 0 : i32
    return %arg0, %c0_i32 : i32, i32
  }
  func.func @transform_1(%arg0: i32, %arg1: i32) -> (i32, i32) {
    %c0_i32 = arith.constant 0 : i32
    %c0_i32_0 = arith.constant 0 : i32
    return %arg1, %c0_i32 : i32, i32
  }
  func.func @transform_2(%arg0: i32, %arg1: i32) -> (i32, i32) {
    %c0_i32 = arith.constant 0 : i32
    %c0_i32_0 = arith.constant 0 : i32
    return %arg1, %c0_i32 : i32, i32
  }
  func.func @transform_3(%arg0: i32, %arg1: i32) -> (i32, i32) {
    %c0_i32 = arith.constant 0 : i32
    return %arg1, %arg0 : i32, i32
  }
}

</mosaic_0001>

<bundles_post_ra>
// kernel: a_call__.2
= control target key start
LH: loop header
LB: loop body
LE: loop exit
PB: predicated region body
PF: predicated region fallthrough
CT: control target
= control target key end

     0   :  { %vm77_vm0 = vcmask 293888   ;;  %v168_v11 = vmov 0   ;;  %s231_s0 = inlined_call_operand.vmem [shape: bf16[128,36], index: 0, kind: input, shape index: {}]   ;;  %s232_s2 = inlined_call_operand.vmem [shape: f32[8,1], index: 2, kind: input, shape index: {}]   ;;  %s233_s1 = inlined_call_operand.vmem [shape: bf16[8,36], index: 1, kind: input, shape index: {}]   ;;  %s234_s3 = inlined_call_operand.vmem [shape: bf16[8,128], index: 3, kind: output, shape index: {}]  }
   0x1   :  { %v165_v0 = vld [vmem:[%s231_s0 + $0x38] sm:$0xff]  ;;  %v164_v2 = vld [vmem:[%s231_s0 + $0x30] sm:$0xff]  ;;  %v163_v4 = vld [vmem:[%s231_s0 + $0x28] sm:$0xff]  ;;  %167 = vset.pattern.permute.xlu0 %v168_v11 }
   0x2   :  { %v103_v1 = vsel %vm77_vm0, %v165_v0, 0  ;;  %v100_v3 = vsel %vm77_vm0, %v164_v2, 0  ;;  %v97_v5 = vsel %vm77_vm0, %v163_v4, 0  ;;  %v162_v6 = vld [vmem:[%s231_s0 + $0x20] sm:$0xff]  ;;  %v161_v8 = vld [vmem:[%s231_s0 + $0x18] sm:$0xff]  ;;  %v160_v12 = vld [vmem:[%s231_s0 + $0x10] sm:$0xff] }
   0x3   :  { %105 = vmatpush.bf16.xpose.msra.mxu0 %v103_v1  ;;  %v94_v7 = vsel %vm77_vm0, %v162_v6, 0  ;;  %v91_v9 = vsel %vm77_vm0, %v161_v8, 0  ;;  %v31_v10 = vld [vmem:[%s232_s2] sm:$0xff]  ;;  %v88_v13 = vsel %vm77_vm0, %v160_v12, 0  ;;  %v159_v14 = vld [vmem:[%s231_s0 + $0x8] sm:$0xff] }
   0x4   :  { %34 = vperm.xlu0 %167, %v31_v10   ;;  %v85_v15 = vsel %vm77_vm0, %v159_v14, 0  ;;  %v158_v16 = vld [vmem:[%s231_s0] sm:$0xff] }
   0x5   :  { %v82_v17 = vsel %vm77_vm0, %v158_v16, 0  ;;  %v14_v18 = vld [vmem:[%s233_s1] sm:$0xf] }
   0xb   :  { %106 = vmatpush.bf16.xpose.msra.mxu0 %v100_v3 }
  0x13   :  { %107 = vmatpush.bf16.xpose.msra.mxu0 %v97_v5 }
  0x1b   :  { %108 = vmatpush.bf16.xpose.msra.mxu0 %v94_v7 }
  0x23   :  { %109 = vmatpush.bf16.xpose.msra.mxu0 %v91_v9 }
  0x2b   :  { %110 = vmatpush.bf16.xpose.msra.mxu0 %v88_v13 }
  0x33   :  { %111 = vmatpush.bf16.xpose.msra.mxu0 %v85_v15 }
  0x3b   :  { %112 = vmatpush.bf16.xpose.msra.mxu0 %v82_v17 }
  0x42   :  { %157 = vmatmul.msk.bf16.vlgmr.msra.gmra.mxu0 %vm77_vm0, %v14_v18 }
  0x76   :  { %v35_v19 = vpop.permute.xlu0 %34 }
  0xbf   :  { %v114_v20 = vpop.f32.mrf.mxu0 }
  0xc0   :  { %v115_v21 = vadd.f32 %v114_v20, %v35_v19 }
  0xc2   :  { %v118_v22 = vmax.f32 %v115_v21, 0.0 }
  0xc4   :  { %v119_v23 = vpack.c.bf16 %v118_v22, %v118_v22 }
  0xc6   :  { %120 = vst [vmem:[%s234_s3] sm:$0xf] %v119_v23 }
  0xc7   :  { %v116_v24 = vpop.f32.mrf.mxu0 }

// kernel: a_call__.3
= control target key start
LH: loop header
LB: loop body
LE: loop exit
PB: predicated region body
PF: predicated region fallthrough
CT: control target
= control target key end

     0   :  { %vm89_vm0 = vcmask 588800   ;;  %v194_v11 = vmov 0   ;;  %s260_s0 = inlined_call_operand.vmem [shape: bf16[128,72], index: 0, kind: input, shape index: {}]   ;;  %s261_s2 = inlined_call_operand.vmem [shape: f32[16,1], index: 2, kind: input, shape index: {}]   ;;  %s262_s1 = inlined_call_operand.vmem [shape: bf16[16,72], index: 1, kind: input, shape index: {}]   ;;  %s263_s3 = inlined_call_operand.vmem [shape: bf16[16,128], index: 3, kind: output, shape index: {}]  }
   0x1   :  { %v186_v0 = vld [vmem:[%s260_s0 + $0x38] sm:$0xff]  ;;  %v185_v2 = vld [vmem:[%s260_s0 + $0x30] sm:$0xff]  ;;  %v184_v4 = vld [vmem:[%s260_s0 + $0x28] sm:$0xff]  ;;  %193 = vset.pattern.permute.xlu0 %v194_v11 }
   0x2   :  { %v115_v1 = vsel %vm89_vm0, %v186_v0, 0  ;;  %v112_v3 = vsel %vm89_vm0, %v185_v2, 0  ;;  %v109_v5 = vsel %vm89_vm0, %v184_v4, 0  ;;  %v183_v6 = vld [vmem:[%s260_s0 + $0x20] sm:$0xff]  ;;  %v182_v8 = vld [vmem:[%s260_s0 + $0x18] sm:$0xff]  ;;  %v181_v12 = vld [vmem:[%s260_s0 + $0x10] sm:$0xff] }
   0x3   :  { %117 = vmatpush.bf16.xpose.msra.mxu0 %v115_v1  ;;  %v106_v7 = vsel %vm89_vm0, %v183_v6, 0  ;;  %v103_v9 = vsel %vm89_vm0, %v182_v8, 0  ;;  %v32_v10 = vld [vmem:[%s261_s2] sm:$0xff]  ;;  %v100_v13 = vsel %vm89_vm0, %v181_v12, 0  ;;  %v33_v14 = vld [vmem:[%s261_s2 + $0x8] sm:$0xff] }
   0x4   :  { %36 = vperm.xlu0 %193, %v32_v10   ;;  %v180_v15 = vld [vmem:[%s260_s0 + $0x8] sm:$0xff]  ;;  %v179_v17 = vld [vmem:[%s260_s0] sm:$0xff] }
   0x5   :  { %v97_v16 = vsel %vm89_vm0, %v180_v15, 0  ;;  %v94_v18 = vsel %vm89_vm0, %v179_v17, 0  ;;  %v178_v19 = vld [vmem:[%s262_s1] sm:$0xff] }
   0xb   :  { %118 = vmatpush.bf16.xpose.msra.mxu0 %v112_v3 }
   0xc   :  { %41 = vperm.xlu0 %193, %v33_v14  }
  0x13   :  { %119 = vmatpush.bf16.xpose.msra.mxu0 %v109_v5 }
  0x1b   :  { %120 = vmatpush.bf16.xpose.msra.mxu0 %v106_v7 }
  0x23   :  { %121 = vmatpush.bf16.xpose.msra.mxu0 %v103_v9 }
  0x2b   :  { %122 = vmatpush.bf16.xpose.msra.mxu0 %v100_v13 }
  0x33   :  { %123 = vmatpush.bf16.xpose.msra.mxu0 %v97_v16 }
  0x3b   :  { %124 = vmatpush.bf16.xpose.msra.mxu0 %v94_v18 }
  0x42   :  { %177 = vmatmul.msk.bf16.vlgmr.msra.gmra.mxu0 %vm89_vm0, %v178_v19 }
  0x76   :  { %v37_v20 = vpop.permute.xlu0 %36 }
  0x7e   :  { %v42_v23 = vpop.permute.xlu0 %41 }
  0xbf   :  { %v126_v21 = vpop.f32.mrf.mxu0 }
  0xc0   :  { %v127_v22 = vadd.f32 %v126_v21, %v37_v20 }
  0xc2   :  { %v131_v26 = vmax.f32 %v127_v22, 0.0 }
  0xc7   :  { %v128_v24 = vpop.f32.mrf.mxu0 }
  0xc8   :  { %v129_v25 = vadd.f32 %v128_v24, %v42_v23 }
  0xca   :  { %v132_v27 = vmax.f32 %v129_v25, 0.0 }
  0xcc   :  { %v190_v28 = vpack.c.bf16 %v132_v27, %v131_v26 }
  0xce   :  { %191 = vst [vmem:[%s263_s3] sm:$0xff] %v190_v28  }

</bundles_post_ra>
